<compile_context>
chip_gen: v6e
topology: v6e:2x2x1
jax: 0.10.0
libtpu: 0.0.40
codegen_flags: <defaults>
</compile_context>

<pallas_src>
import jax
import jax.numpy as jnp
from jax.experimental import pallas as pl
from jax.experimental.pallas import tpu as pltpu

_LANE = 128


def _round_up(n, m):
    return ((n + m - 1) // m) * m


def _pad_axes(a, targets):
    """Zero-pad the trailing len(targets) axes of `a` up to `targets` sizes."""
    pads = [(0, 0)] * (a.ndim - len(targets))
    for ax, tgt in zip(range(a.ndim - len(targets), a.ndim), targets):
        pads.append((0, tgt - a.shape[ax]))
    if all(p == (0, 0) for p in pads):
        return a
    return jnp.pad(a, pads)


def _resident_spec(block_shape, index_map):
    """BlockSpec for VMEM-resident weights/biases (constant index_map).

    Requests a single pipeline buffer (no double buffering) to save VMEM;
    falls back to the default if this Pallas version rejects pipeline_mode.
    """
    try:
        return pl.BlockSpec(block_shape, index_map, pipeline_mode=pl.Buffered(1))
    except TypeError:
        return pl.BlockSpec(block_shape, index_map)


def _gnn_block_kernel(x_ref, adj_ref, w1_ref, b1_ref, w2_ref, b2_ref, o_ref):
    """One block of Bb graphs per grid step.

    x_ref:   (Bb, Np, Fi)  input dtype (f32)
    adj_ref: (Bb, Np, Np)  input dtype (f32)
    w1_ref:  (Fi, Hp), w2_ref: (Hp, Fo)  -- MXU compute dtype, VMEM resident
    b1_ref:  (1, Hp),  b2_ref: (1, Fo)   -- f32 (bias-add / ReLU on f32 VPU)
    o_ref:   (Bb, Np, Fo)                -- lane-dense (Fo % 128 == 0)
    """
    cdt = w1_ref.dtype                       # MXU operand dtype
    Bb, Np, Fi = x_ref.shape
    Hp = w1_ref.shape[1]
    Fo = w2_ref.shape[1]

    # In-kernel cast of the MXU operands (VPU cast hides under the MXU).
    adj = adj_ref[...].astype(cdt)                            # (Bb, Np, Np)
    x2d = x_ref[...].reshape(Bb * Np, Fi).astype(cdt)         # tile-aligned merge

    # gc1: support = x @ W1 + b1   (batch folded into MXU M = Bb*Np)
    #      h = relu(adj @ support) (per graph, batched over Bb)
    s1 = jnp.dot(x2d, w1_ref[...], preferred_element_type=jnp.float32) + b1_ref[...]
    s1 = s1.reshape(Bb, Np, Hp).astype(cdt)
    h = jnp.maximum(
        jnp.einsum("bij,bjh->bih", adj, s1, preferred_element_type=jnp.float32),
        0.0,
    )

    # gc2: support = h @ W2 + b2 ; out = adj @ support
    s2 = (
        jnp.dot(h.reshape(Bb * Np, Hp).astype(cdt), w2_ref[...],
                preferred_element_type=jnp.float32)
        + b2_ref[...]
    )
    s2 = s2.reshape(Bb, Np, Fo).astype(cdt)
    out = jnp.einsum("bij,bjf->bif", adj, s2, preferred_element_type=jnp.float32)
    o_ref[...] = out.astype(o_ref.dtype)


def gnn_block(x, adj, w1, b1, w2, b2, *, compute_dtype=jnp.bfloat16, out_dtype=None):
    """GNNBlock forward.

    x:   (N, F_in)  or (B, N, F_in)
    adj: (N, N)     or (B, N, N)
    w1: (F_in, H), b1: (1, H), w2: (H, F_out), b2: (1, F_out)
    Returns (N, F_out) or (B, N, F_out) matching the input rank.
    """
    squeeze = x.ndim == 2
    if squeeze:
        x = x[None]
        adj = adj[None]
    B, N, F_in = x.shape
    H = w1.shape[1]
    F_out = w2.shape[1]
    out_dtype = x.dtype if out_dtype is None else out_dtype

    cs = jnp.dtype(compute_dtype).itemsize
    os_ = jnp.dtype(out_dtype).itemsize
    xs = jnp.dtype(x.dtype).itemsize
    ads = jnp.dtype(adj.dtype).itemsize

    # Node-axis padding: at least the sublane-packing multiple of the compute
    # dtype (16 for bf16, 8 for f32); for moderately large graphs pad to 128
    # so the adjacency loads and the adj-matmul K dim are lane-dense.
    sub = 16 if cs < 4 else 8
    Np = _round_up(N, _LANE) if N >= 64 else _round_up(N, sub)
    # Lane-dense feature axes (unmasked vld/vst).
    Fi = _round_up(F_in, _LANE)
    Hp = _round_up(H, _LANE)
    Fo = _round_up(F_out, _LANE)

    # VMEM budget from the actual chip (v7x: 64 MiB per TC vs 128 MiB on
    # v5e/v6e), leaving ~25% headroom for Mosaic scratch / semaphores.
    try:
        phys_vmem = pltpu.get_tpu_info().vmem_capacity_bytes
    except Exception:
        phys_vmem = 64 << 20  # most conservative (v7x per-TensorCore)
    vmem_budget = (phys_vmem * 3) // 4

    def vmem_needed(bb):
        blocks = bb * Np * (Fi * xs + Np * ads + Fo * os_)        # x, adj, out tiles
        weights = (Fi * Hp + Hp * Fo) * cs + (Hp + Fo) * 4        # resident params
        interm = bb * Np * ((Fi + Np) * cs + 2 * (Hp + Fo) * 4)   # casts + f32 temps
        return 2 * blocks + weights + interm                      # 2x: double buffer

    # Fold enough graphs per grid step to fill the MXU M dimension (~>=512
    # rows), bounded by the batch size and the VMEM budget.
    Bb = max(1, min(B, pl.cdiv(512, Np)))
    while Bb > 1 and vmem_needed(Bb) > vmem_budget:
        Bb -= 1
    # TODO(synk): for graphs whose whole adjacency cannot sit in VMEM even at
    # Bb == 1 (Np ~ 2.5-3k on v7x), stream adj in node-row tiles instead of
    # holding (Np, Np) resident.

    Bp = _round_up(B, Bb)
    nsteps = Bp // Bb

    # Only zero-padding here (no dtype pre-cast of x/adj -> no extra HBM pass).
    x_p = _pad_axes(x, (Bp, Np, Fi))
    adj_p = _pad_axes(adj, (Bp, Np, Np))
    w1_p = _pad_axes(w1, (Fi, Hp)).astype(compute_dtype)
    w2_p = _pad_axes(w2, (Hp, Fo)).astype(compute_dtype)
    b1_p = _pad_axes(b1, (1, Hp)).astype(jnp.float32)
    b2_p = _pad_axes(b2, (1, Fo)).astype(jnp.float32)

    cp_kwargs = dict(dimension_semantics=("parallel",))
    need = vmem_needed(Bb)
    if need > (16 << 20):
        cp_kwargs["vmem_limit_bytes"] = int(
            min(max(need * 5 // 4, 32 << 20), vmem_budget)
        )

    # Advisory cost estimate so XLA can schedule the surrounding pad/slice ops.
    flops = 2 * Bp * Np * (Fi * Hp + Np * Hp + Hp * Fo + Np * Fo)
    bytes_accessed = (
        x_p.size * xs + adj_p.size * ads
        + (Fi * Hp + Hp * Fo) * cs + (Hp + Fo) * 4
        + Bp * Np * Fo * os_
    )

    out = pl.pallas_call(
        _gnn_block_kernel,
        out_shape=jax.ShapeDtypeStruct((Bp, Np, Fo), out_dtype),
        grid=(nsteps,),
        in_specs=[
            pl.BlockSpec((Bb, Np, Fi), lambda b: (b, 0, 0)),
            pl.BlockSpec((Bb, Np, Np), lambda b: (b, 0, 0)),
            _resident_spec((Fi, Hp), lambda b: (0, 0)),
            _resident_spec((1, Hp), lambda b: (0, 0)),
            _resident_spec((Hp, Fo), lambda b: (0, 0)),
            _resident_spec((1, Fo), lambda b: (0, 0)),
        ],
        out_specs=pl.BlockSpec((Bb, Np, Fo), lambda b: (b, 0, 0)),
        compiler_params=pltpu.CompilerParams(**cp_kwargs),
        cost_estimate=pl.CostEstimate(
            flops=flops, transcendentals=0, bytes_accessed=bytes_accessed
        ),
    )(x_p, adj_p, w1_p, b1_p, w2_p, b2_p)

    out = out[:B, :N, :F_out]
    return out[0] if squeeze else out


def _linear_init(key, fan_in, fan_out):
    # Mimics nn.Linear default init: U(-1/sqrt(fan_in), +1/sqrt(fan_in)).
    kw, kb = jax.random.split(key)
    bound = 1.0 / jnp.sqrt(fan_in)
    # Stored transposed: (fan_in, fan_out), so the kernel computes x @ W.
    w = jax.random.uniform(kw, (fan_in, fan_out), jnp.float32, -bound, bound)
    b = jax.random.uniform(kb, (1, fan_out), jnp.float32, -bound, bound)
    return w, b


def gnn_block_ref(x, adj, w1, b1, w2, b2):
    h = jnp.maximum(adj @ (x @ w1 + b1), 0.0)
    return adj @ (h @ w2 + b2)


if __name__ == "__main__":
    key = jax.random.PRNGKey(0)
    k_x, k_adj, k_l1, k_l2 = jax.random.split(key, 4)

    B = 4              # batch of graphs (folded into the MXU M dim per step)
    N = 8              # nodes per graph
    in_features = 16
    hidden_features = 32
    out_features = 16

    x = jax.random.normal(k_x, (B, N, in_features), jnp.float32)
    adj_raw = jax.random.uniform(k_adj, (B, N, N), jnp.float32)
    adj = adj_raw / jnp.sum(adj_raw, axis=-1, keepdims=True)  # row-normalized

    w1, b1 = _linear_init(k_l1, in_features, hidden_features)
    w2, b2 = _linear_init(k_l2, hidden_features, out_features)

    ref = gnn_block_ref(x, adj, w1, b1, w2, b2)

    # f32 MXU operands: tight match vs pure-JAX reference.
    out_f32 = jax.block_until_ready(
        gnn_block(x, adj, w1, b1, w2, b2, compute_dtype=jnp.float32)
    )
    assert out_f32.shape == (B, N, out_features)
    assert jnp.allclose(out_f32, ref, atol=1e-4, rtol=1e-4), "f32 mismatch vs ref"

    # bf16 MXU operands (default fast path on v6e/v7x), f32 accumulation.
    out_bf16 = jax.block_until_ready(gnn_block(x, adj, w1, b1, w2, b2))
    assert out_bf16.shape == (B, N, out_features)
    assert jnp.allclose(out_bf16, ref, atol=5e-2, rtol=5e-2), "bf16 mismatch vs ref"

    # Single-graph path (original module signature).
    out_single = jax.block_until_ready(
        gnn_block(x[0], adj[0], w1, b1, w2, b2, compute_dtype=jnp.float32)
    )
    assert out_single.shape == (N, out_features)
    assert jnp.allclose(out_single, ref[0], atol=1e-4, rtol=1e-4), "single-graph mismatch"

    print("KERNEL_OK")
</pallas_src>

<mosaic_0001>
module attributes {stable_mosaic.version = 11 : i64} {
  func.func @_gnn_block_kernel(%arg0: i32, %arg1: memref<4x8x128xf32, #tpu.memory_space<vmem>>, %arg2: memref<4x8x8xf32, #tpu.memory_space<vmem>>, %arg3: memref<128x128xf32, #tpu.memory_space<vmem>>, %arg4: memref<1x128xf32, #tpu.memory_space<vmem>>, %arg5: memref<128x128xf32, #tpu.memory_space<vmem>>, %arg6: memref<1x128xf32, #tpu.memory_space<vmem>>, %arg7: memref<4x8x128xf32, #tpu.memory_space<vmem>>) attributes {dimension_semantics = [#tpu.dimension_semantics<parallel>], iteration_bounds = array<i64: 1>, scalar_prefetch = 0 : i64, scratch_operands = 0 : i64, tpu.core_type = #tpu.core_type<tc>, window_params = [{transform_indices = @transform_0, window_bounds = array<i64: 4, 8, 128>}, {transform_indices = @transform_1, window_bounds = array<i64: 4, 8, 8>}, {pipeline_mode = #tpu.pipeline_mode<synchronous>, transform_indices = @transform_2, window_bounds = array<i64: 128, 128>}, {pipeline_mode = #tpu.pipeline_mode<synchronous>, transform_indices = @transform_3, window_bounds = array<i64: 1, 128>}, {pipeline_mode = #tpu.pipeline_mode<synchronous>, transform_indices = @transform_4, window_bounds = array<i64: 128, 128>}, {pipeline_mode = #tpu.pipeline_mode<synchronous>, transform_indices = @transform_5, window_bounds = array<i64: 1, 128>}, {transform_indices = @transform_6, window_bounds = array<i64: 4, 8, 128>}]} {
    %c0 = arith.constant 0 : index
    %c0_0 = arith.constant 0 : index
    %c0_1 = arith.constant 0 : index
    %0 = vector.load %arg2[%c0, %c0_0, %c0_1] : memref<4x8x8xf32, #tpu.memory_space<vmem>>, vector<4x8x8xf32>
    %c0_2 = arith.constant 0 : index
    %c0_3 = arith.constant 0 : index
    %c0_4 = arith.constant 0 : index
    %1 = vector.load %arg1[%c0_2, %c0_3, %c0_4] : memref<4x8x128xf32, #tpu.memory_space<vmem>>, vector<4x8x128xf32>
    %2 = vector.shape_cast %1 : vector<4x8x128xf32> to vector<32x128xf32>
    %c0_5 = arith.constant 0 : index
    %c0_6 = arith.constant 0 : index
    %3 = vector.load %arg3[%c0_5, %c0_6] : memref<128x128xf32, #tpu.memory_space<vmem>>, vector<128x128xf32>
    %cst = arith.constant dense<0.000000e+00> : vector<32x128xf32>
    %4 = tpu.matmul %2, %3, %cst {dimension_numbers = #tpu.dot_dimension_numbers<[1], [0], [0], [1], [0, 0, 1, 1], [], []>} : vector<32x128xf32>, vector<128x128xf32>, vector<32x128xf32> -> vector<32x128xf32>
    %c0_7 = arith.constant 0 : index
    %c0_8 = arith.constant 0 : index
    %5 = vector.load %arg4[%c0_7, %c0_8] : memref<1x128xf32, #tpu.memory_space<vmem>>, vector<1x128xf32>
    %6 = vector.broadcast %5 : vector<1x128xf32> to vector<32x128xf32>
    %7 = arith.addf %4, %6 : vector<32x128xf32>
    %8 = vector.shape_cast %7 : vector<32x128xf32> to vector<4x8x128xf32>
    "tpu.trace_start"() <{level = 10 : i32, message = "bij,bjh->bih"}> : () -> ()
    %cst_9 = arith.constant dense<0.000000e+00> : vector<4x8x128xf32>
    %9 = tpu.matmul %0, %8, %cst_9 {dimension_numbers = #tpu.dot_dimension_numbers<[2], [1], [1], [2], [0, 0, 0, 1, 1, 2], [0], [0]>} : vector<4x8x8xf32>, vector<4x8x128xf32>, vector<4x8x128xf32> -> vector<4x8x128xf32>
    "tpu.trace_stop"() : () -> ()
    %cst_10 = arith.constant 0.000000e+00 : f32
    %10 = vector.broadcast %cst_10 : f32 to vector<4x8x128xf32>
    %11 = arith.maximumf %9, %10 : vector<4x8x128xf32>
    %12 = vector.shape_cast %11 : vector<4x8x128xf32> to vector<32x128xf32>
    %c0_11 = arith.constant 0 : index
    %c0_12 = arith.constant 0 : index
    %13 = vector.load %arg5[%c0_11, %c0_12] : memref<128x128xf32, #tpu.memory_space<vmem>>, vector<128x128xf32>
    %cst_13 = arith.constant dense<0.000000e+00> : vector<32x128xf32>
    %14 = tpu.matmul %12, %13, %cst_13 {dimension_numbers = #tpu.dot_dimension_numbers<[1], [0], [0], [1], [0, 0, 1, 1], [], []>} : vector<32x128xf32>, vector<128x128xf32>, vector<32x128xf32> -> vector<32x128xf32>
    %c0_14 = arith.constant 0 : index
    %c0_15 = arith.constant 0 : index
    %15 = vector.load %arg6[%c0_14, %c0_15] : memref<1x128xf32, #tpu.memory_space<vmem>>, vector<1x128xf32>
    %16 = vector.broadcast %15 : vector<1x128xf32> to vector<32x128xf32>
    %17 = arith.addf %14, %16 : vector<32x128xf32>
    %18 = vector.shape_cast %17 : vector<32x128xf32> to vector<4x8x128xf32>
    "tpu.trace_start"() <{level = 10 : i32, message = "bij,bjf->bif"}> : () -> ()
    %cst_16 = arith.constant dense<0.000000e+00> : vector<4x8x128xf32>
    %19 = tpu.matmul %0, %18, %cst_16 {dimension_numbers = #tpu.dot_dimension_numbers<[2], [1], [1], [2], [0, 0, 0, 1, 1, 2], [0], [0]>} : vector<4x8x8xf32>, vector<4x8x128xf32>, vector<4x8x128xf32> -> vector<4x8x128xf32>
    "tpu.trace_stop"() : () -> ()
    %c0_17 = arith.constant 0 : index
    %c0_18 = arith.constant 0 : index
    %c0_19 = arith.constant 0 : index
    %20 = vector.load %arg7[%c0_17, %c0_18, %c0_19] : memref<4x8x128xf32, #tpu.memory_space<vmem>>, vector<4x8x128xf32>
    tpu.vector_store %arg7[%c0_17, %c0_18, %c0_19], %19 {strides = array<i32>} : memref<4x8x128xf32, #tpu.memory_space<vmem>>, vector<4x8x128xf32>,
    return
  }
  func.func @transform_0(%arg0: i32) -> (i32, i32, i32) {
    %c0_i32 = arith.constant 0 : i32
    %c0_i32_0 = arith.constant 0 : i32
    %c0_i32_1 = arith.constant 0 : i32
    return %arg0, %c0_i32, %c0_i32_0 : i32, i32, i32
  }
  func.func @transform_1(%arg0: i32) -> (i32, i32, i32) {
    %c0_i32 = arith.constant 0 : i32
    %c0_i32_0 = arith.constant 0 : i32
    %c0_i32_1 = arith.constant 0 : i32
    return %arg0, %c0_i32, %c0_i32_0 : i32, i32, i32
  }
  func.func @transform_2(%arg0: i32) -> (i32, i32) {
    %c0_i32 = arith.constant 0 : i32
    %c0_i32_0 = arith.constant 0 : i32
    %c0_i32_1 = arith.constant 0 : i32
    return %c0_i32, %c0_i32_0 : i32, i32
  }
  func.func @transform_3(%arg0: i32) -> (i32, i32) {
    %c0_i32 = arith.constant 0 : i32
    %c0_i32_0 = arith.constant 0 : i32
    %c0_i32_1 = arith.constant 0 : i32
    return %c0_i32, %c0_i32_0 : i32, i32
  }
  func.func @transform_4(%arg0: i32) -> (i32, i32) {
    %c0_i32 = arith.constant 0 : i32
    %c0_i32_0 = arith.constant 0 : i32
    %c0_i32_1 = arith.constant 0 : i32
    return %c0_i32, %c0_i32_0 : i32, i32
  }
  func.func @transform_5(%arg0: i32) -> (i32, i32) {
    %c0_i32 = arith.constant 0 : i32
    %c0_i32_0 = arith.constant 0 : i32
    %c0_i32_1 = arith.constant 0 : i32
    return %c0_i32, %c0_i32_0 : i32, i32
  }
  func.func @transform_6(%arg0: i32) -> (i32, i32, i32) {
    %c0_i32 = arith.constant 0 : i32
    %c0_i32_0 = arith.constant 0 : i32
    %c0_i32_1 = arith.constant 0 : i32
    return %arg0, %c0_i32, %c0_i32_0 : i32, i32, i32
  }
}

</mosaic_0001>

<bundles_post_ra>
// kernel: tpu_custom_call.1
= control target key start
LH: loop header
LB: loop body
LE: loop exit
PB: predicated region body
PF: predicated region fallthrough
CT: control target
= control target key end

     0   :  { %11 = vsyncpa [#allocation3], 0  ;;  %s1330_s0 = inlined_call_operand.hbm [shape: f32[4,8,128], index: 0, kind: input, shape index: {}]   ;;  %s1331_s1 = inlined_call_operand.hbm [shape: f32[4,8,8], index: 1, kind: input, shape index: {}]   ;;  %s1332_s2 = inlined_call_operand.hbm [shape: f32[128,128], index: 2, kind: input, shape index: {}]   ;;  %s1333_s3 = inlined_call_operand.vmem [shape: f32[1,128], index: 3, kind: input, shape index: {}]   ;;  %s1334_s4 = inlined_call_operand.hbm [shape: f32[128,128], index: 4, kind: input, shape index: {}]   ;;  %s1335_s5 = inlined_call_operand.vmem [shape: f32[1,128], index: 5, kind: input, shape index: {}]   ;;  %s1336_s6 = inlined_call_operand.hbm [shape: f32[4,8,128], index: 6, kind: output, shape index: {}]  }
   0x1   :  { %12 = vsyncpa [#allocation6], 0 }
   0x2   :  { %13 = vsyncpa [#allocation9], 0 }
   0x3   :  { %14 = vsyncpa [#allocation4], 0  ;;  %s1202_s21 = smov [#allocation5]   ;;  %s1203_s23 = smov [#allocation2]  }
   0x4   :  { %s32_s22 = sshll.u32 %s1202_s21, 4  ;;  %s20_s24 = sshll.u32 %s1203_s23, 4  ;;  %s33_s22 = int_to_ptr.vmem [resolvable:$true] %s32_s22  ;;  %s21_s24 = int_to_ptr.vmem [resolvable:$true] %s20_s24 }
   0x5   :  { %s1102_s25 = scalar_lea.vmem %s33_s22, 512  ;;  %p1107_p1 = scmp.lt.s32.totalorder %s33_s22, %s33_s22 }
   0x6   :  { %p1103_p0 = scmp.ne.s32.totalorder %s33_s22, %s1102_s25  ;;  %p1108_p2 = scmp.lt.s32.totalorder %s1102_s25, %s1102_s25 }
   0x8   :  { %p1109_p3 = por %p1108_p2, %p1107_p1 }
   0xa   :  { %p1110_p4 = pnand %p1109_p3, %p1103_p0 }
   0xc   :  { %1113 = shalt.err (!%p1110_p4)
}
   0xd   :  { %s1204_s26 = smov 128   ;;  %s1205_s27 = smov 8  }
   0xe   :  { %38 = dma.hbm_to_vmem [thread:$0]  %s1331_s1, 512, %s33_s22, [#allocation6], %s1204_s26, %s1204_s26, %s1205_s27  }
   0xf   :  { %s1122_s30 = scalar_lea.vmem %s21_s24, 512  ;;  %p1127_p6 = scmp.lt.s32.totalorder %s21_s24, %s21_s24 }
  0x10   :  { %p1123_p5 = scmp.ne.s32.totalorder %s21_s24, %s1122_s30  ;;  %p1128_p7 = scmp.lt.s32.totalorder %s1122_s30, %s1122_s30 }
  0x12   :  { %p1129_p8 = por %p1128_p7, %p1127_p6 }
  0x14   :  { %p1130_p9 = pnand %p1129_p8, %p1123_p5 }
  0x16   :  { %1133 = shalt.err (!%p1130_p9)
}
  0x17   :  { %26 = dma.hbm_to_vmem [thread:$0]  %s1330_s0, 512, %s21_s24, [#allocation3], %s1204_s26, %s1204_s26, %s1205_s27  }
  0x18   :  { %s1206_s9 = smov [#allocation7]   ;;  %s1207_s11 = smov [#allocation8]  }
  0x19   :  { %s44_s10 = sshll.u32 %s1206_s9, 4  ;;  %s58_s12 = sshll.u32 %s1207_s11, 4  ;;  %s45_s10 = int_to_ptr.vmem [resolvable:$true] %s44_s10  ;;  %s59_s12 = int_to_ptr.vmem [resolvable:$true] %s58_s12 }
  0x1a   :  { %s1142_s1 = scalar_lea.vmem %s45_s10, 2048  ;;  %p1147_p11 = scmp.lt.s32.totalorder %s45_s10, %s45_s10 }
  0x1b   :  { %p1143_p10 = scmp.ne.s32.totalorder %s45_s10, %s1142_s1  ;;  %p1148_p12 = scmp.lt.s32.totalorder %s1142_s1, %s1142_s1 }
  0x1d   :  { %p1149_p13 = por %p1148_p12, %p1147_p11 }
  0x1f   :  { %p1150_p0 = pnand %p1149_p13, %p1143_p10 }
  0x21   :  { %1153 = shalt.err (!%p1150_p0)
}
  0x22   :  { %50 = dma.hbm_to_vmem [thread:$0]  %s1332_s2, 2048, %s45_s10, [#allocation6], %s1204_s26, %s1204_s26, %s1205_s27  }
  0x23   :  { %s1162_s0 = scalar_lea.vmem %s59_s12, 2048  ;;  %p1167_p2 = scmp.lt.s32.totalorder %s59_s12, %s59_s12 }
  0x24   :  { %p1163_p1 = scmp.ne.s32.totalorder %s59_s12, %s1162_s0  ;;  %p1168_p3 = scmp.lt.s32.totalorder %s1162_s0, %s1162_s0 }
  0x26   :  { %p1169_p4 = por %p1168_p3, %p1167_p2 }
  0x28   :  { %p1170_p5 = pnand %p1169_p4, %p1163_p1 }
  0x2a   :  { %1173 = shalt.err (!%p1170_p5)
}
  0x2b   :  { %64 = dma.hbm_to_vmem [thread:$0]  %s1334_s4, 2048, %s59_s12, [#allocation9], %s1204_s26, %s1204_s26, %s1205_s27  }
  0x2c   :  { %1194 = dma.done.wait [#allocation3], 512  }
  0x2d   :  { %1195 = vsyncadd [#allocation3], 4294966784 }
  0x2e   :  { %1196 = dma.done.wait [#allocation6], 2560  }
  0x2f   :  { %1197 = vsyncadd [#allocation6], 4294964736 }
  0x30   :  { %1198 = dma.done.wait [#allocation9], 2048  }
  0x31   :  { %1199 = vsyncadd [#allocation9], 4294965248  ;;  %v102_v0 = vld [vmem:[#allocation7 + $0x78] sm:$0xff]  ;;  %v101_v1 = vld [vmem:[#allocation7 + $0x70] sm:$0xff]  ;;  %v1208_v20 = vmov 0.0   ;;  %vm1209_vm0 = vmmov 0  }
  0x32   :  { %969 = vmatprep.subr.mxu0 %v102_v0  ;;  %v100_v2 = vld [vmem:[#allocation7 + $0x68] sm:$0xff]  ;;  %v99_v3 = vld [vmem:[#allocation7 + $0x60] sm:$0xff]  ;;  %v98_v5 = vld [vmem:[#allocation7 + $0x58] sm:$0xff]  ;;  %1007 = vmatprep.subr.mxu1 %v1208_v20  ;;  %vm195_vm1 = vcmask 64512  }
  0x33   :  { %970 = vmatpush3.msra.mxu0 %v102_v0  ;;  %v83_v4 = vld [vmem:[#allocation2] sm:$0xff]  ;;  %v97_v6 = vld [vmem:[#allocation7 + $0x50] sm:$0xff]  ;;  %v96_v7 = vld [vmem:[#allocation7 + $0x48] sm:$0xff]  ;;  %1009 = vmatprep.mubr.msk.f32.mxu1 %vm1209_vm0, %v1208_v20 }
  0x34   :  { %971 = vmatprep.subr.mxu0 %v101_v1  ;;  %1001 = vmatprep.mubr.f32.mxu0 %v83_v4  ;;  %v95_v8 = vld [vmem:[#allocation7 + $0x40] sm:$0xff]  ;;  %v94_v9 = vld [vmem:[#allocation7 + $0x38] sm:$0xff]  ;;  %v93_v10 = vld [vmem:[#allocation7 + $0x30] sm:$0xff] }
  0x35   :  { %972 = vmatpush3.msra.mxu0 %v101_v1  ;;  %v92_v11 = vld [vmem:[#allocation7 + $0x28] sm:$0xff]  ;;  %v91_v12 = vld [vmem:[#allocation7 + $0x20] sm:$0xff]  ;;  %v90_v13 = vld [vmem:[#allocation7 + $0x18] sm:$0xff] }
  0x36   :  { %973 = vmatprep.subr.mxu0 %v100_v2  ;;  %v89_v14 = vld [vmem:[#allocation7 + $0x10] sm:$0xff]  ;;  %v88_v15 = vld [vmem:[#allocation7 + $0x8] sm:$0xff]  ;;  %v87_v16 = vld [vmem:[#allocation7] sm:$0xff] }
  0x37   :  { %974 = vmatpush3.msra.mxu0 %v100_v2  ;;  %v84_v17 = vld [vmem:[#allocation2 + $0x8] sm:$0xff]  ;;  %v85_v18 = vld [vmem:[#allocation2 + $0x10] sm:$0xff]  ;;  %v86_v19 = vld [vmem:[#allocation2 + $0x18] sm:$0xff] }
  0x38   :  { %975 = vmatprep.subr.mxu0 %v99_v3  ;;  %v903_v22 = vld [vmem:[%s1333_s3] ss:$0 sm:$0xff]  ;;  %v1286_v30 = vld [vmem:[#allocation5 + $0x8] sm:$0xff]  ;;  %v1293_v31 = vld [vmem:[#allocation5 + $0x10] sm:$0xff] }
  0x39   :  { %976 = vmatpush3.msra.mxu0 %v99_v3  ;;  %v1279_v25 = vld [vmem:[#allocation5] sm:$0xff]  ;;  %v507_v33 = vld [vmem:[#allocation8 + $0x78] sm:$0xff]  ;;  %v506_v35 = vld [vmem:[#allocation8 + $0x70] sm:$0xff] }
  0x3a   :  { %977 = vmatprep.subr.mxu0 %v98_v5  ;;  %v1300_v34 = vld [vmem:[#allocation5 + $0x18] sm:$0xff]  ;;  %v505_v36 = vld [vmem:[#allocation8 + $0x68] sm:$0xff]  ;;  %v504_v37 = vld [vmem:[#allocation8 + $0x60] sm:$0xff] }
  0x3b   :  { %978 = vmatpush3.msra.mxu0 %v98_v5  ;;  %v503_v38 = vld [vmem:[#allocation8 + $0x58] sm:$0xff]  ;;  %v502_v39 = vld [vmem:[#allocation8 + $0x50] sm:$0xff]  ;;  %v501_v40 = vld [vmem:[#allocation8 + $0x48] sm:$0xff] }
  0x3c   :  { %979 = vmatprep.subr.mxu0 %v97_v6  ;;  %v500_v41 = vld [vmem:[#allocation8 + $0x40] sm:$0xff]  ;;  %v499_v42 = vld [vmem:[#allocation8 + $0x38] sm:$0xff]  ;;  %v498_v43 = vld [vmem:[#allocation8 + $0x30] sm:$0xff] }
  0x3d   :  { %980 = vmatpush3.msra.mxu0 %v97_v6  ;;  %v497_v44 = vld [vmem:[#allocation8 + $0x28] sm:$0xff]  ;;  %v496_v45 = vld [vmem:[#allocation8 + $0x20] sm:$0xff]  ;;  %v495_v46 = vld [vmem:[#allocation8 + $0x18] sm:$0xff] }
  0x3e   :  { %981 = vmatprep.subr.mxu0 %v96_v7  ;;  %v494_v47 = vld [vmem:[#allocation8 + $0x10] sm:$0xff]  ;;  %v493_v48 = vld [vmem:[#allocation8 + $0x8] sm:$0xff]  ;;  %v492_v49 = vld [vmem:[#allocation8] sm:$0xff] }
  0x3f   :  { %982 = vmatpush3.msra.mxu0 %v96_v7  ;;  %v908_v63 = vld [vmem:[%s1335_s5] ss:$0 sm:$0xff]  ;;  %s1210_s5 = smov [#allocation10]  }
  0x40   :  { %983 = vmatprep.subr.mxu0 %v95_v8  ;;  %s889_s18 = sshll.u32 %s1210_s5, 4  ;;  %s890_s18 = int_to_ptr.vmem [resolvable:$true] %s889_s18 }
  0x41   :  { %984 = vmatpush3.msra.mxu0 %v95_v8  ;;  %s1174_s19 = scalar_lea.vmem %s890_s18, 512  ;;  %p1179_p7 = scmp.lt.s32.totalorder %s890_s18, %s890_s18 }
  0x42   :  { %985 = vmatprep.subr.mxu0 %v94_v9  ;;  %p1175_p6 = scmp.ne.s32.totalorder %s890_s18, %s1174_s19  ;;  %p1180_p8 = scmp.lt.s32.totalorder %s1174_s19, %s1174_s19 }
  0x43   :  { %986 = vmatpush3.msra.mxu0 %v94_v9 }
  0x44   :  { %987 = vmatprep.subr.mxu0 %v93_v10  ;;  %p1181_p9 = por %p1180_p8, %p1179_p7 }
  0x45   :  { %988 = vmatpush3.msra.mxu0 %v93_v10 }
  0x46   :  { %989 = vmatprep.subr.mxu0 %v92_v11  ;;  %p1182_p10 = pnand %p1181_p9, %p1175_p6 }
  0x47   :  { %990 = vmatpush3.msra.mxu0 %v92_v11 }
  0x48   :  { %991 = vmatprep.subr.mxu0 %v91_v12 }
  0x49   :  { %992 = vmatpush3.msra.mxu0 %v91_v12 }
  0x4a   :  { %993 = vmatprep.subr.mxu0 %v90_v13 }
  0x4b   :  { %994 = vmatpush3.msra.mxu0 %v90_v13 }
  0x4c   :  { %995 = vmatprep.subr.mxu0 %v89_v14 }
  0x4d   :  { %996 = vmatpush3.msra.mxu0 %v89_v14 }
  0x4e   :  { %997 = vmatprep.subr.mxu0 %v88_v15 }
  0x4f   :  { %998 = vmatpush3.msra.mxu0 %v88_v15 }
  0x50   :  { %999 = vmatprep.subr.mxu0 %v87_v16 }
  0x51   :  { %1000 = vmatpush3.msra.mxu0 %v87_v16 }
  0x52   :  { %1002 = vmatmul.mubr.f32.vlgmr.msra.gmra.mxu0 %v84_v17  ;;  %1065 = vmatprep.subr.mxu0 %v1208_v20 }
  0x53   :  { %1004 = vmatprep.mubr.f32.mxu0 %v85_v18 }
  0x56   :  { %1005 = vmatmul.mubr.f32.gmra.mxu0 %v86_v19 }
  0x57   :  { %1067 = vmatprep.mubr.msk.f32.mxu0 %vm1209_vm0, %v1208_v20 }
 0x112   :  { %v1003_v21 = vpop.f32.mrf.mxu0 }
 0x113   :  { %v182_v27 = vadd.f32 %v1003_v21, %v903_v22 }
 0x114   :  { %v176_v23 = vpop.f32.mrf.mxu0 }
 0x115   :  { %v177_v24 = vadd.f32 %v903_v22, %v176_v23 }
 0x116   :  { %v1006_v26 = vpop.f32.mrf.mxu0 }
 0x117   :  { %1008 = vmatpush3.msra.mxu1 %v177_v24  ;;  %v192_v32 = vadd.f32 %v1006_v26, %v903_v22 }
 0x118   :  { %1010 = vmatmul.mubr.msk.f32.vlgmr.msra.gmra.mxu1 %vm195_vm1, %v1279_v25  ;;  %1012 = vmatprep.subr.mxu1 %v1208_v20  ;;  %v186_v28 = vpop.f32.mrf.mxu0 }
 0x119   :  { %1013 = vmatpush3.msra.mxu1 %v182_v27  ;;  %1014 = vmatprep.mubr.msk.f32.mxu1 %vm1209_vm0, %v1208_v20  ;;  %v187_v29 = vadd.f32 %v903_v22, %v186_v28 }
 0x11a   :  { %1017 = vmatprep.subr.mxu1 %v1208_v20 }
 0x11c   :  { %1015 = vmatmul.mubr.msk.f32.vlgmr.msra.gmra.mxu1 %vm195_vm1, %v1286_v30 }
 0x11d   :  { %1018 = vmatpush3.msra.mxu1 %v187_v29  ;;  %1019 = vmatprep.mubr.msk.f32.mxu1 %vm1209_vm0, %v1208_v20 }
 0x11e   :  { %1022 = vmatprep.subr.mxu1 %v1208_v20 }
 0x120   :  { %1020 = vmatmul.mubr.msk.f32.vlgmr.msra.gmra.mxu1 %vm195_vm1, %v1293_v31 }
 0x121   :  { %1023 = vmatpush3.msra.mxu1 %v192_v32  ;;  %1024 = vmatprep.mubr.msk.f32.mxu1 %vm1209_vm0, %v1208_v20 }
 0x122   :  { %1027 = vmatprep.subr.mxu1 %v507_v33 }
 0x124   :  { %1025 = vmatmul.mubr.msk.f32.vlgmr.msra.gmra.mxu1 %vm195_vm1, %v1300_v34 }
 0x125   :  { %1028 = vmatpush3.msra.mxu1 %v507_v33 }
 0x126   :  { %1029 = vmatprep.subr.mxu1 %v506_v35 }
 0x127   :  { %1030 = vmatpush3.msra.mxu1 %v506_v35 }
 0x128   :  { %1031 = vmatprep.subr.mxu1 %v505_v36 }
 0x129   :  { %1032 = vmatpush3.msra.mxu1 %v505_v36 }
 0x12a   :  { %1033 = vmatprep.subr.mxu1 %v504_v37 }
 0x12b   :  { %1034 = vmatpush3.msra.mxu1 %v504_v37 }
 0x12c   :  { %1035 = vmatprep.subr.mxu1 %v503_v38 }
 0x12d   :  { %1036 = vmatpush3.msra.mxu1 %v503_v38 }
 0x12e   :  { %1037 = vmatprep.subr.mxu1 %v502_v39 }
 0x12f   :  { %1038 = vmatpush3.msra.mxu1 %v502_v39 }
 0x130   :  { %1039 = vmatprep.subr.mxu1 %v501_v40 }
 0x131   :  { %1040 = vmatpush3.msra.mxu1 %v501_v40 }
 0x132   :  { %1041 = vmatprep.subr.mxu1 %v500_v41 }
 0x133   :  { %1042 = vmatpush3.msra.mxu1 %v500_v41 }
 0x134   :  { %1043 = vmatprep.subr.mxu1 %v499_v42 }
 0x135   :  { %1044 = vmatpush3.msra.mxu1 %v499_v42 }
 0x136   :  { %1045 = vmatprep.subr.mxu1 %v498_v43 }
 0x137   :  { %1046 = vmatpush3.msra.mxu1 %v498_v43 }
 0x138   :  { %1047 = vmatprep.subr.mxu1 %v497_v44 }
 0x139   :  { %1048 = vmatpush3.msra.mxu1 %v497_v44 }
 0x13a   :  { %1049 = vmatprep.subr.mxu1 %v496_v45 }
 0x13b   :  { %1050 = vmatpush3.msra.mxu1 %v496_v45 }
 0x13c   :  { %1051 = vmatprep.subr.mxu1 %v495_v46 }
 0x13d   :  { %1052 = vmatpush3.msra.mxu1 %v495_v46 }
 0x13e   :  { %1053 = vmatprep.subr.mxu1 %v494_v47 }
 0x13f   :  { %1054 = vmatpush3.msra.mxu1 %v494_v47 }
 0x140   :  { %1055 = vmatprep.subr.mxu1 %v493_v48 }
 0x141   :  { %1056 = vmatpush3.msra.mxu1 %v493_v48 }
 0x142   :  { %1057 = vmatprep.subr.mxu1 %v492_v49 }
 0x143   :  { %1058 = vmatpush3.msra.mxu1 %v492_v49 }
 0x1d8   :  { %v265_v50 = vpop.f32.mrf.mxu1 }
 0x1d9   :  { %v488_v51 = vmax.f32 %v265_v50, 0.0 }
 0x1da   :  { %v1011_v52 = vpop.f32.mrf.mxu1 }
 0x1db   :  { %1059 = vmatprep.mubr.f32.mxu1 %v488_v51 }
 0x1dc   :  { %v338_v53 = vpop.f32.mrf.mxu1 }
 0x1dd   :  { %v489_v54 = vmax.f32 %v338_v53, 0.0 }
 0x1de   :  { %v1016_v55 = vpop.f32.mrf.mxu1 }
 0x1df   :  { %1060 = vmatmul.mubr.f32.vlgmr.msra.gmra.mxu1 %v489_v54 }
 0x1e0   :  { %v411_v56 = vpop.f32.mrf.mxu1 }
 0x1e1   :  { %v490_v57 = vmax.f32 %v411_v56, 0.0 }
 0x1e2   :  { %v1021_v58 = vpop.f32.mrf.mxu1 }
 0x1e3   :  { %1062 = vmatprep.mubr.f32.mxu1 %v490_v57 }
 0x1e4   :  { %v484_v59 = vpop.f32.mrf.mxu1 }
 0x1e5   :  { %v491_v60 = vmax.f32 %v484_v59, 0.0 }
 0x1e6   :  { %v1026_v61 = vpop.f32.mrf.mxu1 }
 0x1e7   :  { %1063 = vmatmul.mubr.f32.gmra.mxu1 %v491_v60 }
 0x29f   :  { %v1061_v62 = vpop.f32.mrf.mxu1 }
 0x2a0   :  { %v587_v2 = vadd.f32 %v1061_v62, %v908_v63 }
 0x2a1   :  { %v581_v0 = vpop.f32.mrf.mxu1 }
 0x2a2   :  { %v582_v1 = vadd.f32 %v908_v63, %v581_v0 }
 0x2a4   :  { %1066 = vmatpush3.msra.mxu0 %v582_v1 }
 0x2a5   :  { %1070 = vmatprep.subr.mxu0 %v1208_v20  ;;  %1068 = vmatmul.mubr.msk.f32.vlgmr.msra.gmra.mxu0 %vm195_vm1, %v1279_v25 }
 0x2a6   :  { %1071 = vmatpush3.msra.mxu0 %v587_v2  ;;  %1072 = vmatprep.mubr.msk.f32.mxu0 %vm1209_vm0, %v1208_v20 }
 0x2a7   :  { %v1064_v3 = vpop.f32.mrf.mxu1  ;;  %1075 = vmatprep.subr.mxu0 %v1208_v20 }
 0x2a8   :  { %v597_v6 = vadd.f32 %v1064_v3, %v908_v63 }
 0x2a9   :  { %v591_v4 = vpop.f32.mrf.mxu1  ;;  %1073 = vmatmul.mubr.msk.f32.vlgmr.msra.gmra.mxu0 %vm195_vm1, %v1286_v30 }
 0x2aa   :  { %v592_v5 = vadd.f32 %v908_v63, %v591_v4  ;;  %1077 = vmatprep.mubr.msk.f32.mxu0 %vm1209_vm0, %v1208_v20 }
 0x2ac   :  { %1076 = vmatpush3.msra.mxu0 %v592_v5 }
 0x2ad   :  { %1080 = vmatprep.subr.mxu0 %v1208_v20  ;;  %1078 = vmatmul.mubr.msk.f32.vlgmr.msra.gmra.mxu0 %vm195_vm1, %v1293_v31 }
 0x2ae   :  { %1081 = vmatpush3.msra.mxu0 %v597_v6  ;;  %1082 = vmatprep.mubr.msk.f32.mxu0 %vm1209_vm0, %v1208_v20 }
 0x2b1   :  { %1083 = vmatmul.mubr.msk.f32.vlgmr.msra.gmra.mxu0 %vm195_vm1, %v1300_v34 }
 0x365   :  { %v666_v7 = vpop.f32.mrf.mxu0 }
 0x366   :  { %880 = vst [vmem:[#allocation10] sm:$0xff] %v666_v7 }
 0x367   :  { %v1069_v8 = vpop.f32.mrf.mxu0 }
 0x369   :  { %v736_v9 = vpop.f32.mrf.mxu0 }
 0x36a   :  { %881 = vst [vmem:[#allocation10 + $0x8] sm:$0xff] %v736_v9 }
 0x36b   :  { %v1074_v10 = vpop.f32.mrf.mxu0 }
 0x36d   :  { %v806_v11 = vpop.f32.mrf.mxu0 }
 0x36e   :  { %882 = vst [vmem:[#allocation10 + $0x10] sm:$0xff] %v806_v11 }
 0x36f   :  { %v1079_v12 = vpop.f32.mrf.mxu0 }
 0x371   :  { %v876_v13 = vpop.f32.mrf.mxu0 }
 0x372   :  { %883 = vst [vmem:[#allocation10 + $0x18] sm:$0xff] %v876_v13 }
 0x373   :  { %v1084_v14 = vpop.f32.mrf.mxu0 }
 0x374   :  { %1185 = shalt.err (!%p1182_p10)
}
 0x375   :  { %895 = dma.vmem_to_hbm [thread:$0]  %s890_s18, 512, %s1336_s6, [#allocation4], %s1204_s26, %s1204_s26, %s1205_s27  }
 0x376   :  { %1200 = dma.done.wait [#allocation4], 512  }
 0x377   :  { %1201 = vsyncadd [#allocation4], 4294966784 }
 0x378   :  { %899 = vsyncpa [#allocation3], 1 }
 0x379   :  { %900 = vsyncpa [#allocation6], 1 }
 0x37a   :  { %901 = vsyncpa [#allocation9], 1 }
 0x37b   :  { %902 = vsyncpa [#allocation4], 1 }

</bundles_post_ra>
